<compile_context>
chip_gen: v7x
topology: tpu7x:2x2x1
jax: 0.10.0
libtpu: 0.0.40
codegen_flags: <defaults>
</compile_context>

<pallas_src>
import functools
import math

import jax
import jax.numpy as jnp
from jax.experimental import pallas as pl
from jax.experimental.pallas import tpu as pltpu


def _round_up(x, m):
    return ((x + m - 1) // m) * m


def _vmem_limit(resident_bytes, temp_bytes):
    # Double-buffered pipeline blocks + in-flight temporaries + headroom,
    # clamped so we never ask for more than v7x's 64 MiB physical VMEM.
    est = 2 * resident_bytes + temp_bytes
    est = int(est * 1.5) + (8 << 20)
    return int(min(max(est, 24 << 20), 64 << 20))


# --------------------------------------------------------------------------- #
# Kernel 1: hoisted input projections -> head-major bf16 (b, H, s, d_h)
# --------------------------------------------------------------------------- #
def _proj_kernel(x_ref, w_ref, o_ref, *, n_heads, d_h):
    # Single full-width matmul on the MXU (bf16 operands, f32 accumulation),
    # then split into per-head tiles ONCE per token (not per q-tile).
    y = jnp.dot(x_ref[0], w_ref[...], preferred_element_type=jnp.float32)
    yb = y.astype(jnp.bfloat16)
    for h in range(n_heads):
        o_ref[0, h] = yb[:, h * d_h:(h + 1) * d_h]


def _project_heads(x, w, *, n_heads, d_h, seq_tile):
    b, s, d_in = x.shape
    resident = (seq_tile * d_in * 2 + d_in * n_heads * d_h * 2
                + n_heads * seq_tile * d_h * 2)
    temps = 4 * seq_tile * n_heads * d_h * 4
    return pl.pallas_call(
        functools.partial(_proj_kernel, n_heads=n_heads, d_h=d_h),
        out_shape=jax.ShapeDtypeStruct((b, n_heads, s, d_h), jnp.bfloat16),
        grid_spec=pltpu.PrefetchScalarGridSpec(
            num_scalar_prefetch=0,
            grid=(b, s // seq_tile),
            in_specs=[
                pl.BlockSpec((1, seq_tile, d_in), lambda i, j: (i, j, 0)),
                pl.BlockSpec((d_in, n_heads * d_h), lambda i, j: (0, 0)),
            ],
            out_specs=pl.BlockSpec((1, n_heads, seq_tile, d_h),
                                   lambda i, j: (i, 0, j, 0)),
        ),
        compiler_params=pltpu.CompilerParams(
            dimension_semantics=("parallel", "parallel"),
            vmem_limit_bytes=_vmem_limit(resident, temps)),
    )(x, w)


# --------------------------------------------------------------------------- #
# Kernel 2: flash-style attention + output proj + residual + LayerNorm
# --------------------------------------------------------------------------- #
def _attn_kernel(*refs, n_heads, eps, add_residual, s_v_valid, need_mask):
    if add_residual:
        (qp_ref, kp_ref, vp_ref, res_ref, wfc_ref, gamma_ref, beta_ref,
         out_ref, m_sc, l_sc, acc_sc) = refs
    else:
        (qp_ref, kp_ref, vp_ref, wfc_ref, gamma_ref, beta_ref,
         out_ref, m_sc, l_sc, acc_sc) = refs
        res_ref = None

    kv = pl.program_id(2)
    tk = kp_ref.shape[2]

    @pl.when(kv == 0)
    def _():
        m_sc[...] = jnp.full(m_sc.shape, -jnp.inf, dtype=m_sc.dtype)
        l_sc[...] = jnp.zeros(l_sc.shape, dtype=l_sc.dtype)
        acc_sc[...] = jnp.zeros(acc_sc.shape, dtype=acc_sc.dtype)

    q = qp_ref[0]          # (H, tq, d_k) bf16, 1/sqrt(d_k) pre-folded into W_Q
    k = kp_ref[0]          # (H, tk, d_k) bf16
    v = vp_ref[0]          # (H, tk, d_v) bf16

    # All-head scores in one batched contraction (heads as leading batch dim).
    s = jnp.einsum('hqd,hkd->hqk', q, k,
                   preferred_element_type=jnp.float32)        # (H, tq, tk) f32

    if need_mask:
        # Mask padded key rows (sequence padded up to a tile multiple).
        col = kv * tk + jax.lax.broadcasted_iota(jnp.int32, (1, 1, tk), 2)
        s = jnp.where(col < s_v_valid, s, -1e30)

    # Online softmax update.
    m_prev = m_sc[...]
    m_new = jnp.maximum(m_prev, jnp.max(s, axis=-1, keepdims=True))
    alpha = jnp.exp(m_prev - m_new)
    p = jnp.exp(s - m_new)
    l_sc[...] = alpha * l_sc[...] + jnp.sum(p, axis=-1, keepdims=True)
    acc_sc[...] = alpha * acc_sc[...] + jnp.einsum(
        'hqk,hkd->hqd', p.astype(jnp.bfloat16), v,
        preferred_element_type=jnp.float32)
    m_sc[...] = m_new

    @pl.when(kv == pl.num_programs(2) - 1)
    def _():
        ctx = acc_sc[...] * pl.reciprocal(l_sc[...], approx=True)  # (H, tq, d_v)
        ctx_b = ctx.astype(jnp.bfloat16)
        # Concat-free output projection: concat(ctx_h) @ W_fc == sum_h ctx_h @ W_fc[h].
        out = jnp.dot(ctx_b[0], wfc_ref[0], preferred_element_type=jnp.float32)
        for h in range(1, n_heads):
            out = out + jnp.dot(ctx_b[h], wfc_ref[h],
                                preferred_element_type=jnp.float32)
        if add_residual:
            out = out + res_ref[0].astype(jnp.float32)
        # LayerNorm over d_model (biased variance, eps inside rsqrt).
        mean = jnp.mean(out, axis=-1, keepdims=True)
        centered = out - mean
        var = jnp.mean(centered * centered, axis=-1, keepdims=True)
        normed = centered * jax.lax.rsqrt(var + eps)
        out_ref[0] = normed * gamma_ref[...] + beta_ref[...]


# --------------------------------------------------------------------------- #
# Wrapper
# --------------------------------------------------------------------------- #
def multi_head_attention(Q, K, V, params, *, n_heads, d_k, d_v, eps=1e-6):
    b, s_v, d_model = V.shape
    s_q, d_delta = Q.shape[1], Q.shape[2]
    if Q.shape[0] != b:                      # mirror PyTorch Q.expand(b, -1, -1)
        Q = jnp.broadcast_to(Q, (b, s_q, d_delta))
    add_residual = (s_q == s_v)

    # Tile sizes: 128 is safe across v5e/v6e/v7x; s_v is tiled flash-style so
    # VMEM use is bounded independent of sequence length.
    # TODO(synk): per-chip tuning (tq/tk = 256 on 128 MiB-VMEM v5e/v6e).
    tq = min(128, _round_up(s_q, 8))
    tk = min(128, _round_up(s_v, 8))
    s_q_pad = _round_up(s_q, tq)
    s_v_pad = _round_up(s_v, tk)

    def pad_rows(x, target):
        extra = target - x.shape[1]
        return x if extra == 0 else jnp.pad(x, ((0, 0), (0, extra), (0, 0)))

    # bf16 activations: halves HBM->VMEM traffic, removes in-kernel input casts.
    Qb = pad_rows(Q.astype(jnp.bfloat16), s_q_pad)
    Kb = pad_rows(K.astype(jnp.bfloat16), s_v_pad)
    Vb = pad_rows(V.astype(jnp.bfloat16), s_v_pad)

    # bf16 weights; softmax scale folded into W_Q; W_fc pre-split per head.
    inv_scale = 1.0 / math.sqrt(d_k)
    wq = (params["wq"] * inv_scale).astype(jnp.bfloat16)
    wk = params["wk"].astype(jnp.bfloat16)
    wv = params["wv"].astype(jnp.bfloat16)
    wfc = params["wfc"].astype(jnp.bfloat16).reshape(n_heads, d_v, d_model)
    gamma = params["gamma"].astype(jnp.float32)
    beta = params["beta"].astype(jnp.float32)

    # Hoisted projections (once per token), head-major bf16.
    qp = _project_heads(Qb, wq, n_heads=n_heads, d_h=d_k, seq_tile=tq)
    kp = _project_heads(Kb, wk, n_heads=n_heads, d_h=d_k, seq_tile=tk)
    vp = _project_heads(Vb, wv, n_heads=n_heads, d_h=d_v, seq_tile=tk)

    grid = (b, s_q_pad // tq, s_v_pad // tk)

    in_specs = [
        pl.BlockSpec((1, n_heads, tq, d_k), lambda i, j, k: (i, 0, j, 0)),
        pl.BlockSpec((1, n_heads, tk, d_k), lambda i, j, k: (i, 0, k, 0)),
        pl.BlockSpec((1, n_heads, tk, d_v), lambda i, j, k: (i, 0, k, 0)),
    ]
    inputs = [qp, kp, vp]
    if add_residual:
        # Residual rows for this q-tile (s_q == s_v => identical padding as Vb).
        in_specs.append(pl.BlockSpec((1, tq, d_model), lambda i, j, k: (i, j, 0)))
        inputs.append(Vb)
    in_specs += [
        pl.BlockSpec((n_heads, d_v, d_model), lambda i, j, k: (0, 0, 0)),
        pl.BlockSpec((1, d_model), lambda i, j, k: (0, 0)),
        pl.BlockSpec((1, d_model), lambda i, j, k: (0, 0)),
    ]
    inputs += [wfc, gamma, beta]

    resident = (n_heads * tq * d_k * 2 + n_heads * tk * d_k * 2
                + n_heads * tk * d_v * 2
                + (tq * d_model * 2 if add_residual else 0)
                + n_heads * d_v * d_model * 2 + 2 * d_model * 4
                + tq * d_model * 4)
    temps = (4 * n_heads * tq * tk * 4           # scores / p temporaries (f32)
             + n_heads * tq * (d_v + 2) * 4      # m/l/acc scratch
             + 4 * tq * d_model * 4)             # finalize temporaries

    kernel = functools.partial(
        _attn_kernel, n_heads=n_heads, eps=eps, add_residual=add_residual,
        s_v_valid=s_v, need_mask=(s_v_pad != s_v))

    out = pl.pallas_call(
        kernel,
        out_shape=jax.ShapeDtypeStruct((b, s_q_pad, d_model), jnp.float32),
        grid_spec=pltpu.PrefetchScalarGridSpec(
            num_scalar_prefetch=0,
            grid=grid,
            in_specs=in_specs,
            out_specs=pl.BlockSpec((1, tq, d_model), lambda i, j, k: (i, j, 0)),
            scratch_shapes=[
                pltpu.VMEM((n_heads, tq, 1), jnp.float32),    # m (running max)
                pltpu.VMEM((n_heads, tq, 1), jnp.float32),    # l (running denom)
                pltpu.VMEM((n_heads, tq, d_v), jnp.float32),  # acc (running ctx)
            ],
        ),
        compiler_params=pltpu.CompilerParams(
            dimension_semantics=("parallel", "parallel", "arbitrary"),
            vmem_limit_bytes=_vmem_limit(resident, temps)),
    )(*inputs)

    return out[:, :s_q, :]


# --------------------------------------------------------------------------- #
# Params / reference / test
# --------------------------------------------------------------------------- #
def init_params(key, *, d_model, d_delta, n_heads, d_k, d_v):
    ks = jax.random.split(key, 4)
    # Weights stored as (in_features, out_features) == PyTorch weight.T
    wq = jax.random.normal(ks[0], (d_delta, n_heads * d_k), jnp.float32) * 0.1
    wk = jax.random.normal(ks[1], (d_model, n_heads * d_k), jnp.float32) * 0.1
    wv = jax.random.normal(ks[2], (d_model, n_heads * d_v), jnp.float32) * 0.1
    wfc = jax.random.normal(ks[3], (n_heads * d_v, d_model), jnp.float32) * 0.1
    gamma = jnp.ones((1, d_model), jnp.float32)   # LayerNorm weight
    beta = jnp.zeros((1, d_model), jnp.float32)   # LayerNorm bias
    return dict(wq=wq, wk=wk, wv=wv, wfc=wfc, gamma=gamma, beta=beta)


def reference(Q, K, V, params, *, n_heads, d_k, d_v, eps=1e-6):
    """Pure-JAX f32 reference mirroring the PyTorch forward (mask=None, dropout=0)."""
    b, s_q, _ = Q.shape
    _, s_v, d_model = V.shape
    residual = V
    q = (Q @ params["wq"]).reshape(b, s_q, n_heads, d_k).transpose(0, 2, 1, 3)
    k = (K @ params["wk"]).reshape(b, s_v, n_heads, d_k).transpose(0, 2, 1, 3)
    v = (V @ params["wv"]).reshape(b, s_v, n_heads, d_v).transpose(0, 2, 1, 3)
    att = jnp.einsum("bhqd,bhkd->bhqk", q, k) / math.sqrt(d_k)
    att = jax.nn.softmax(att, axis=-1)
    o = jnp.einsum("bhqk,bhkd->bhqd", att, v)
    o = o.transpose(0, 2, 1, 3).reshape(b, s_q, n_heads * d_v)
    o = o @ params["wfc"]
    if s_q == s_v:
        o = o + residual
    mean = jnp.mean(o, axis=-1, keepdims=True)
    var = jnp.mean((o - mean) ** 2, axis=-1, keepdims=True)
    return (o - mean) / jnp.sqrt(var + eps) * params["gamma"] + params["beta"]


if __name__ == "__main__":
    # Small, consistent shapes: d_model=32, n_heads=4 -> d_k=d_v=8, d_delta=d_model.
    b, s_q, s_v = 2, 8, 8
    d_model = 32
    n_heads = 4
    d_k = d_v = math.ceil(d_model / n_heads)
    d_delta = d_model

    key = jax.random.PRNGKey(0)
    kq, kk, kv, kp = jax.random.split(key, 4)
    Q = jax.random.normal(kq, (b, s_q, d_delta), jnp.float32)
    K = jax.random.normal(kk, (b, s_v, d_model), jnp.float32)
    V = jax.random.normal(kv, (b, s_v, d_model), jnp.float32)
    params = init_params(kp, d_model=d_model, d_delta=d_delta,
                         n_heads=n_heads, d_k=d_k, d_v=d_v)

    out = multi_head_attention(Q, K, V, params, n_heads=n_heads, d_k=d_k, d_v=d_v)
    out = jax.block_until_ready(out)

    ref = reference(Q, K, V, params, n_heads=n_heads, d_k=d_k, d_v=d_v)
    assert out.shape == (b, s_q, d_model)
    # bf16 matmul operands (f32 accumulation) -> loosened tolerance vs f32 reference.
    assert jnp.allclose(out, ref, atol=5e-2, rtol=5e-2), (
        "mismatch vs reference, max abs err = "
        f"{float(jnp.max(jnp.abs(out - ref)))}")

    print("KERNEL_OK")
</pallas_src>

<mosaic_0001>
module attributes {stable_mosaic.version = 11 : i64} {
  func.func @_proj_kernel(%arg0: i32, %arg1: i32, %arg2: memref<1x8x32xbf16, #tpu.memory_space<vmem>>, %arg3: memref<32x32xbf16, #tpu.memory_space<vmem>>, %arg4: memref<1x4x8x8xbf16, #tpu.memory_space<vmem>>) attributes {dimension_semantics = [#tpu.dimension_semantics<parallel>, #tpu.dimension_semantics<parallel>], iteration_bounds = array<i64: 2, 1>, scalar_prefetch = 0 : i64, scratch_operands = 0 : i64, tpu.core_type = #tpu.core_type<tc>, window_params = [{transform_indices = @transform_0, window_bounds = array<i64: 1, 8, 32>}, {pipeline_mode = #tpu.pipeline_mode<synchronous>, transform_indices = @transform_1, window_bounds = array<i64: 32, 32>}, {transform_indices = @transform_2, window_bounds = array<i64: 1, 4, 8, 8>}]} {
    %c0 = arith.constant 0 : index
    %c0_0 = arith.constant 0 : index
    %c0_1 = arith.constant 0 : index
    %0 = vector.load %arg2[%c0, %c0_0, %c0_1] : memref<1x8x32xbf16, #tpu.memory_space<vmem>>, vector<1x8x32xbf16>
    %1 = vector.shape_cast %0 : vector<1x8x32xbf16> to vector<8x32xbf16>
    %c0_2 = arith.constant 0 : index
    %c0_3 = arith.constant 0 : index
    %2 = vector.load %arg3[%c0_2, %c0_3] : memref<32x32xbf16, #tpu.memory_space<vmem>>, vector<32x32xbf16>
    %cst = arith.constant dense<0.000000e+00> : vector<8x32xf32>
    %3 = tpu.matmul %1, %2, %cst {dimension_numbers = #tpu.dot_dimension_numbers<[1], [0], [0], [1], [0, 0, 1, 1], [], []>} : vector<8x32xbf16>, vector<32x32xbf16>, vector<8x32xf32> -> vector<8x32xf32>
    %4 = arith.truncf %3 : vector<8x32xf32> to vector<8x32xbf16>
    %5 = vector.extract_strided_slice %4 {offsets = [0, 0], sizes = [8, 8], strides = [1, 1]} : vector<8x32xbf16> to vector<8x8xbf16>
    %c0_4 = arith.constant 0 : index
    %c0_5 = arith.constant 0 : index
    %c0_6 = arith.constant 0 : index
    %c0_7 = arith.constant 0 : index
    %6 = vector.load %arg4[%c0_4, %c0_5, %c0_6, %c0_7] : memref<1x4x8x8xbf16, #tpu.memory_space<vmem>>, vector<1x1x8x8xbf16>
    %7 = vector.shape_cast %6 : vector<1x1x8x8xbf16> to vector<8x8xbf16>
    %8 = vector.shape_cast %5 : vector<8x8xbf16> to vector<1x1x8x8xbf16>
    tpu.vector_store %arg4[%c0_4, %c0_5, %c0_6, %c0_7], %8 {strides = array<i32>} : memref<1x4x8x8xbf16, #tpu.memory_space<vmem>>, vector<1x1x8x8xbf16>,
    %9 = vector.extract_strided_slice %4 {offsets = [0, 8], sizes = [8, 8], strides = [1, 1]} : vector<8x32xbf16> to vector<8x8xbf16>
    %c0_8 = arith.constant 0 : index
    %c1 = arith.constant 1 : index
    %c0_9 = arith.constant 0 : index
    %c0_10 = arith.constant 0 : index
    %10 = vector.load %arg4[%c0_8, %c1, %c0_9, %c0_10] : memref<1x4x8x8xbf16, #tpu.memory_space<vmem>>, vector<1x1x8x8xbf16>
    %11 = vector.shape_cast %10 : vector<1x1x8x8xbf16> to vector<8x8xbf16>
    %12 = vector.shape_cast %9 : vector<8x8xbf16> to vector<1x1x8x8xbf16>
    tpu.vector_store %arg4[%c0_8, %c1, %c0_9, %c0_10], %12 {strides = array<i32>} : memref<1x4x8x8xbf16, #tpu.memory_space<vmem>>, vector<1x1x8x8xbf16>,
    %13 = vector.extract_strided_slice %4 {offsets = [0, 16], sizes = [8, 8], strides = [1, 1]} : vector<8x32xbf16> to vector<8x8xbf16>
    %c0_11 = arith.constant 0 : index
    %c2 = arith.constant 2 : index
    %c0_12 = arith.constant 0 : index
    %c0_13 = arith.constant 0 : index
    %14 = vector.load %arg4[%c0_11, %c2, %c0_12, %c0_13] : memref<1x4x8x8xbf16, #tpu.memory_space<vmem>>, vector<1x1x8x8xbf16>
    %15 = vector.shape_cast %14 : vector<1x1x8x8xbf16> to vector<8x8xbf16>
    %16 = vector.shape_cast %13 : vector<8x8xbf16> to vector<1x1x8x8xbf16>
    tpu.vector_store %arg4[%c0_11, %c2, %c0_12, %c0_13], %16 {strides = array<i32>} : memref<1x4x8x8xbf16, #tpu.memory_space<vmem>>, vector<1x1x8x8xbf16>,
    %17 = vector.extract_strided_slice %4 {offsets = [0, 24], sizes = [8, 8], strides = [1, 1]} : vector<8x32xbf16> to vector<8x8xbf16>
    %c0_14 = arith.constant 0 : index
    %c3 = arith.constant 3 : index
    %c0_15 = arith.constant 0 : index
    %c0_16 = arith.constant 0 : index
    %18 = vector.load %arg4[%c0_14, %c3, %c0_15, %c0_16] : memref<1x4x8x8xbf16, #tpu.memory_space<vmem>>, vector<1x1x8x8xbf16>
    %19 = vector.shape_cast %18 : vector<1x1x8x8xbf16> to vector<8x8xbf16>
    %20 = vector.shape_cast %17 : vector<8x8xbf16> to vector<1x1x8x8xbf16>
    tpu.vector_store %arg4[%c0_14, %c3, %c0_15, %c0_16], %20 {strides = array<i32>} : memref<1x4x8x8xbf16, #tpu.memory_space<vmem>>, vector<1x1x8x8xbf16>,
    return
  }
  func.func @transform_0(%arg0: i32, %arg1: i32) -> (i32, i32, i32) {
    %c0_i32 = arith.constant 0 : i32
    %c0_i32_0 = arith.constant 0 : i32
    return %arg0, %arg1, %c0_i32 : i32, i32, i32
  }
  func.func @transform_1(%arg0: i32, %arg1: i32) -> (i32, i32) {
    %c0_i32 = arith.constant 0 : i32
    %c0_i32_0 = arith.constant 0 : i32
    %c0_i32_1 = arith.constant 0 : i32
    return %c0_i32, %c0_i32_0 : i32, i32
  }
  func.func @transform_2(%arg0: i32, %arg1: i32) -> (i32, i32, i32, i32) {
    %c0_i32 = arith.constant 0 : i32
    %c0_i32_0 = arith.constant 0 : i32
    %c0_i32_1 = arith.constant 0 : i32
    return %arg0, %c0_i32, %arg1, %c0_i32_0 : i32, i32, i32, i32
  }
}

</mosaic_0001>

<bundles_post_ra>
// kernel: tpu_custom_call.1
= control target key start
LH: loop header
LB: loop body
LE: loop exit
PB: predicated region body
PF: predicated region fallthrough
CT: control target
= control target key end

     0   :  { %7 = vsyncpa [#allocation3], 0  ;;  %s897_s0 = inlined_call_operand.hbm [shape: bf16[2,8,32], index: 0, kind: input, shape index: {}]   ;;  %s898_s1 = inlined_call_operand.hbm [shape: bf16[32,32], index: 1, kind: input, shape index: {}]   ;;  %s899_s2 = inlined_call_operand.hbm [shape: bf16[2,4,8,8], index: 2, kind: output, shape index: {}]  }
   0x1   :  { %9 = vsyncpa [#allocation3 + $0x1], 0 }
   0x2   :  { %10 = vsyncpa [#allocation6], 0 }
   0x3   :  { %11 = vsyncpa [#allocation4], 0 }
   0x4   :  { %13 = vsyncpa [#allocation4 + $0x1], 0  ;;  %s676_s9 = smov 0   ;;  %s678_s10 = smov 0  }
   0x5   :  { %s680_s11 = smov 0   ;;  %s682_s12 = smov 0  }
   0x6   :  { %s684_s13 = smov 0   ;;  %s686_s14 = smov 0  }
   0x7 LB: > { %s383_s15 = sadd.s32 4294967295, %s647_s14   ;;  %s384_s16 = sadd.s32 4294967294, %s647_s14   ;;  %s647_s14 = sphi %s686_s14, %s19_s14   ;;  %s643_s13 = sphi %s684_s13, %s923_s13   ;;  %s639_s12 = sphi %s682_s12, %s922_s12   ;;  %s635_s11 = sphi %s680_s11, %s921_s11   ;;  %s631_s10 = sphi %s678_s10, %s920_s10   ;;  %s627_s9 = sphi %s676_s9, %s919_s9  }
   0x8   : > { %p53_p0 = scmp.ne.s32.totalorder %s631_s10, %s627_s9  ;;  %p710_p1 = scmp.eq.s32.totalorder %s383_s15, 0 }
   0x9   : > { %p714_p2 = scmp.eq.s32.totalorder %s383_s15, 1  ;;  %p106_p3 = scmp.eq.s32.totalorder %s384_s16, 1 }
   0xa   : > { %s904_s17 = scalar_select %p710_p1, 1, 0 }
   0xb   : > { %s905_s18 = scalar_select %p714_p2, 1, 0 }
   0xc   : > { %p720_p4 = por %p710_p1, %p53_p0  ;;  %p385_p5 = scmp.ge.s32.totalorder %s647_s14, 1 }
   0xd   : > { %p725_p6 = por %p106_p3, %p53_p0  ;;  %p113_p7 = scmp.lt.s32.totalorder %s647_s14, 3 }
   0xe   : > { %s906_s19 = scalar_select %p720_p4, 1, 0 }
   0xf   : > { %s907_s20 = scalar_select %p725_p6, 1, 0 }
  0x10   : > { %p730_p8 = pnand %p385_p5, %p113_p7  ;;  %s649_s22 = smov [#allocation5]  }
  0x11   : > { %s125_s23 = sshll.u32 %s649_s22, 4  ;;  %s31_s25 = sadd.s32 1, %s643_s13  ;;  %s126_s23 = int_to_ptr.vmem [resolvable:$true] %s125_s23 }
  0x12   : > { %s908_s21 = scalar_select %p730_p8, 1, 0 }
  0x13   : > { %p427_p9 = pneg %p730_p8  ;;  %s503_s28 = scalar_lea.hbm %s898_s1, 256 }
  0x14   : > { %p504_p12 = scmp.ne.s32.totalorder %s898_s1, %s503_s28  ;;  %p510_p5 = scmp.lt.u32.totalorder %s503_s28, %s898_s1 }
  0x15   : > { %p739_p11 = pnand %p427_p9, %p710_p1 }
  0x17   : > { %p505_p13 = pneg %p739_p11 }
  0x19   : > { %p506_p0 = pnand %p505_p13, %p504_p12 }
  0x1b   : > { %p507_p3 = pneg %p506_p0 }
  0x1d   : > { %p512_p7 = pnand %p510_p5, %p507_p3 }
  0x1f   : > { %515 = shalt.err (!%p512_p7)
}
  0x20   : > { %s516_s5 = scalar_lea.vmem %s126_s23, 256  ;;  %p524_p1 = scmp.lt.s32.totalorder %s126_s23, %s126_s23 }
  0x21   : > { %p517_p9 = scmp.ne.s32.totalorder %s126_s23, %s516_s5  ;;  %p525_p4 = scmp.lt.s32.totalorder %s516_s5, %s516_s5 }
  0x23   : > { %p519_p10 = pnand %p517_p9, %p505_p13  ;;  %p526_p8 = por %p525_p4, %p524_p1 }
  0x25   : > { %p520_p6 = pneg %p519_p10 }
  0x27   : > { %p527_p2 = pnand %p526_p8, %p520_p6 }
  0x29   : > { %530 = shalt.err (!%p527_p2)
}
  0x2a   : > { %s650_s6 = smov 64   ;;  %s651_s7 = smov 4  }
  0x2b   : > { %430 = dma.hbm_to_vmem [thread:$0]  (!%p739_p11), %s898_s1, 256, %s126_s23, [#allocation6], %s650_s6, %s650_s6, %s651_s7  }
  0x2c   : > { %p33_p1 = scmp.ge.s32.totalorder %s31_s25, 2  ;;  %s40_s16 = sadd.s32 1, %s635_s11 }
  0x2d   : > { %p47_p2 = scmp.ne.s32.totalorder %s635_s11, %s631_s10  ;;  %p48_p4 = scmp.eq.s32.totalorder %s647_s14, 0 }
  0x2e   : > { %s925_s25 = smov (%p33_p1, %s31_s25), 0  ;;  %p911_p8 = scmp.ne.s32.totalorder %s905_s18, 0 }
  0x2f   : > { %p766_p6 = por %p48_p4, %p47_p2  ;;  %s35_s24 = ssub.s32 %s643_s13, %s925_s25 }
  0x30   : > { %p772_p10 = por %p911_p8, %p47_p2  ;;  %p440_p12 = scmp.lt.s32.totalorder %s647_s14, 2 }
  0x31   : > { %p38_p11 = scmp.eq.s32.totalorder %s35_s24, 0  ;;  %s139_s23 = sand.u32 1, %s635_s11  }
  0x32   : > { %s388_s27 = sshll.u32 %s139_s23, 2  ;;  %s389_s29 = sshll.u32 %s643_s13, 6 }
  0x33   : > { %s781_s28 = scalar_select %p38_p11, %s635_s11, %s40_s16  }
  0x34   : > { %s787_s4 = scalar_lea.hbm %s897_s0, %s389_s29  ;;  %s143_s18 = scalar_lea.vmem [#allocation2], %s388_s27 }
  0x35   : > { %s151_s5 = sshll.u32 %s143_s18, 4  ;;  %p793_p13 = pnand %p440_p12, %p766_p6  ;;  %s789_s5 = int_to_ptr.vmem [resolvable:$true] %s151_s5 }
  0x36   : > { %s140_s7 = scalar_lea.sflag [#allocation3], %s139_s23  ;;  %s531_s8 = scalar_lea.hbm %s787_s4, 64 }
  0x37   : > { %p532_p0 = scmp.ne.s32.totalorder %s787_s4, %s531_s8  ;;  %p533_p3 = pneg %p793_p13 }
  0x38   : > { %s536_s24 = scalar_lea.hbm %s897_s0, 128  ;;  %p537_p9 = scmp.lt.u32.totalorder %s787_s4, %s897_s0 }
  0x39   : > { %p534_p5 = pnand %p533_p3, %p532_p0  ;;  %p538_p1 = scmp.lt.u32.totalorder %s536_s24, %s531_s8 }
  0x3a   : > { %p540_p4 = scmp.lt.u32.totalorder %s531_s8, %s787_s4 }
  0x3b   : > { %p535_p7 = pneg %p534_p5  ;;  %p539_p2 = por %p538_p1, %p537_p9 }
  0x3d   : > { %p541_p6 = por %p540_p4, %p539_p2 }
  0x3f   : > { %p542_p8 = pnand %p541_p6, %p535_p7 }
  0x41   : > { %545 = shalt.err (!%p542_p8)
}
  0x42   : > { %s546_s23 = scalar_lea.vmem %s789_s5, 64  ;;  %s652_s29 = smov [#allocation2]  }
  0x43   : > { %p547_p12 = scmp.ne.s32.totalorder %s789_s5, %s546_s23  ;;  %s551_s30 = sshll.u32 %s652_s29, 4  ;;  %s552_s30 = int_to_ptr.vmem [resolvable:$false] %s551_s30 }
  0x44   : > { %s553_s3 = scalar_lea.vmem %s552_s30, 128  ;;  %p554_p5 = scmp.lt.s32.totalorder %s789_s5, %s552_s30 }
  0x45   : > { %p549_p11 = pnand %p547_p12, %p533_p3  ;;  %p555_p9 = scmp.lt.s32.totalorder %s553_s3, %s546_s23 }
  0x47   : > { %p550_p0 = pneg %p549_p11  ;;  %p556_p1 = por %p555_p9, %p554_p5 }
  0x49   : > { %p557_p2 = pnand %p556_p1, %p550_p0 }
  0x4b   : > { %560 = shalt.err (!%p557_p2)
}
  0x4c   : > { %434 = dma.hbm_to_vmem [thread:$0]  (!%p793_p13), %s787_s4, 64, %s789_s5, %s140_s7  }
  0x4d   : > { %p914_p7 = scmp.ne.s32.totalorder %s908_s21, 0 }
  0x4e   : > { %s825_s18 = sand.u32 (!%p914_p7), 1, %s631_s10   ;;  %p915_p3 = scmp.ne.s32.totalorder (!%p914_p7), %s906_s19, 0 }
  0x4f   : > { %160 = sbr.rel (%p914_p7) target bundleno = 447 (0x1bf), region = 28  ;;  %s391_s8 = sshll.u32 (!%p914_p7), %s825_s18, 2 }
  0x50   : > { %s163_s15 = scalar_lea.sflag (!%p914_p7), [#allocation3], %s825_s18  ;;  %s166_s16 = scalar_lea.vmem (!%p914_p7), [#allocation2], %s391_s8 }
  0x56   : > { %614 = dma.done.wait (%p915_p3), %s163_s15, 64  }
  0x57   : > { %616 = vsyncadd (%p915_p3), %s163_s15, 4294967232  ;;  %p916_p4 = scmp.ne.s32.totalorder %s904_s17, 0 }
  0x59   : > { %618 = dma.done.wait (%p916_p4), [#allocation6], 256  }
  0x5a   : > { %620 = vsyncadd (%p916_p4), [#allocation6], 4294967040  ;;  %v653_v0 = vmov 0.0   ;;  %vm654_vm0 = vmmov 0   ;;  %v501_v1 = vld [vmem:[#allocation5] sm:$0xff]   ;;  %v502_v2 = vld [vmem:[#allocation5 + $0x8] sm:$0xff]  }
  0x5b   : > { %411 = vmatprep.subr.bf16.mxu0 %v653_v0  ;;  %415 = vmatprep.mubr.msk.bf16.mxu0 %vm654_vm0, %v653_v0  ;;  %v192_v3 = vld [vmem:[%s166_s16] sm:$0xf]  ;;  %vm209_vm1 = vcmask 261120   ;;  %s393_s19 = sshll.u32 %s825_s18, 4  ;;  %vm254_vm2 = vcmask 60416   ;;  %s655_s17 = smov 104  }
  0x5c   : > { %412 = vmatpush3.bf16.msra.mxu0 %v501_v1  ;;  %s656_s21 = smov 120   ;;  %s190_s4 = scalar_lea.vmem [#allocation7], %s393_s19 }
  0x5d   : > { %413 = vmatprep.subr.bf16.mxu0 %v653_v0  ;;  %s657_s5 = smov 112   ;;  %s289_s6 = sshll.u32 %s190_s4, 4  ;;  %s840_s6 = int_to_ptr.vmem [resolvable:$true] %s289_s6 }
  0x5e   : > { %s407_s7 = sshll.u32 %s639_s12, 8  ;;  %s275_s12 = scalar_lea.sflag [#allocation4], %s825_s18 }
  0x5f   : > { %s847_s27 = scalar_lea.hbm %s899_s2, %s407_s7  ;;  %s561_s23 = scalar_lea.vmem %s840_s6, 256 }
  0x60   : > { %414 = vmatpush3.bf16.msra.mxu0 %v502_v2  ;;  %p562_p13 = scmp.ne.s32.totalorder %s840_s6, %s561_s23  ;;  %s658_s29 = smov [#allocation7]  }
  0x61   : > { %s565_s30 = sshll.u32 %s658_s29, 4  ;;  %s566_s30 = int_to_ptr.vmem [resolvable:$false] %s565_s30 }
  0x62   : > { %p563_p6 = pnand %p562_p13, %p772_p10  ;;  %s567_s3 = scalar_lea.vmem %s566_s30, 512 }
  0x63   : > { %416 = vmatmul.mubr.msk.bf16.vlgmr.msra.gmra.mrb[0].mxu0 %vm209_vm1, %v192_v3  ;;  %p568_p12 = scmp.lt.s32.totalorder %s840_s6, %s566_s30  ;;  %p569_p11 = scmp.lt.s32.totalorder %s567_s3, %s561_s23 }
  0x64   : > { %p564_p8 = pneg %p563_p6 }
  0x65   : > { %p570_p0 = por %p569_p11, %p568_p12 }
  0x67   : > { %p571_p5 = pnand %p570_p0, %p564_p8 }
 0x136   : > { %v247_v4 = vpop.f32.mrb[0].mxu0 }
 0x137   : > { %v253_v5 = vpack.c.bf16 %v247_v4, %v247_v4  ;;  %v417_v6 = vpop.f32.mrb[1].mxu0 }
 0x138   : > { %v250_v7 = vpop.f32.mrb[2].mxu0 }
 0x139   : > { %269 = vrot.lane.b32.xlu1 %v253_v5, %s655_s17  ;;  %259 = vrot.lane.b32.xlu0 %v253_v5, %s656_s21  ;;  %v418_v8 = vpop.f32.mrb[3].mxu0  ;;  %255 = vst.msk [vmem:[%s190_s4] sm:$0xf] %vm254_vm2, %v253_v5 }
 0x13d   : > { %264 = vrot.lane.b32.xlu0 %v253_v5, %s657_s5 }
 0x1ab   : > { %v270_v9 = vpop.permute.xlu1 %269  ;;  %v260_v10 = vpop.permute.xlu0 %259 }
 0x1ac   : > { %400 = vst.msk [vmem:[%s190_s4 + $0xc] sm:$0xf] %vm254_vm2, %v270_v9  ;;  %398 = vst.msk [vmem:[%s190_s4 + $0x4] sm:$0xf] %vm254_vm2, %v260_v10 }
 0x1af   : > { %v265_v11 = vpop.permute.xlu0 %264 }
 0x1b0   : > { %399 = vst.msk [vmem:[%s190_s4 + $0x8] sm:$0xf] %vm254_vm2, %v265_v11 }
 0x1b1   : > { %574 = shalt.err (!%p571_p5)
}
 0x1b2   : > { %s575_s8 = scalar_lea.hbm %s847_s27, 256  ;;  %s579_s19 = scalar_lea.hbm %s899_s2, 512 }
 0x1b3   : > { %p576_p9 = scmp.ne.s32.totalorder %s847_s27, %s575_s8  ;;  %p580_p7 = scmp.lt.u32.totalorder %s847_s27, %s899_s2 }
 0x1b4   : > { %p581_p3 = scmp.lt.u32.totalorder %s579_s19, %s575_s8  ;;  %p583_p13 = scmp.lt.u32.totalorder %s575_s8, %s847_s27 }
 0x1b5   : > { %p577_p1 = pnand %p576_p9, %p772_p10 }
 0x1b6   : > { %p582_p4 = por %p581_p3, %p580_p7 }
 0x1b7   : > { %p578_p2 = pneg %p577_p1 }
 0x1b8   : > { %p584_p6 = por %p583_p13, %p582_p4 }
 0x1ba   : > { %p585_p8 = pnand %p584_p6, %p578_p2 }
 0x1bc   : > { %588 = shalt.err (!%p585_p8)
}
 0x1bd   : > { %s659_s4 = smov 64   ;;  %s660_s5 = smov 4  }
 0x1be   : > { %425 = dma.vmem_to_hbm [thread:$0]  (%p772_p10), %s840_s6, 256, %s847_s27, %s275_s12, %s659_s4, %s659_s4, %s660_s5  }
 0x1bf PF: > { %s304_s7 = sand.u32 1, %s627_s9   ;;  %p917_p12 = scmp.ne.s32.totalorder %s907_s20, 0 }
 0x1c0   : > { %p918_p11 = scmp.ge.s32.totalorder %s647_s14, 2  ;;  %s305_s24 = scalar_lea.sflag [#allocation4], %s304_s7 }
 0x1c2   : > { %p436_p0 = pnand %p918_p11, %p917_p12 }
 0x1c4   : > { %622 = dma.done.wait (!%p436_p0), %s305_s24, 256  }
 0x1c5   : > { %624 = vsyncadd (!%p436_p0), %s305_s24, 4294967040  ;;  %s19_s14 = sadd.s32 1, %s647_s14   ;;  %s919_s9 = smov %s631_s10 }
 0x1c6   : > { %p16_p5 = scmp.ge.s32.totalorder %s19_s14, 4   ;;  %s920_s10 = smov %s635_s11 }
 0x1c7   : > { %s921_s11 = smov %s781_s28  ;;  %s922_s12 = smov %s643_s13 }
 0x1c8   : > { %s923_s13 = smov %s925_s25  ;;  %18 = sbr.rel (!%p16_p5) target bundleno = 7 (0x7), region = 80 }
 0x1cf   :  { %310 = vsyncpa [#allocation3], 1 }
 0x1d0   :  { %312 = vsyncpa [#allocation3 + $0x1], 1 }
 0x1d1   :  { %313 = vsyncpa [#allocation6], 1 }
 0x1d2   :  { %314 = vsyncpa [#allocation4], 1 }
 0x1d3   :  { %316 = vsyncpa [#allocation4 + $0x1], 1 }

</bundles_post_ra>
